<compile_context>
chip_gen: v5e
topology: v5e:2x2
jax: 0.10.0
libtpu: 0.0.40
codegen_flags: <defaults>
</compile_context>

<pallas_src>
import jax
import jax.numpy as jnp
from jax.experimental import pallas as pl
from jax.experimental.pallas import tpu as pltpu


def _round_up(n, m):
    return ((n + m - 1) // m) * m


# ----------------------------------------------------------------------------
# Parameter packing: one [max_fan_in + 1, total_out] f32 slab.
#   rows 0..fan_in-1, cols off..off+fan_out  -> weight of that layer
#   row  bias_row,    cols off..off+fan_out  -> bias   of that layer
# mu / log_std heads are fused into a single "head" layer of width 2*latent.
# ----------------------------------------------------------------------------
def pack_params(params):
    entries = [
        ("enc1", params["we1"], params["be1"]),
        ("enc2", params["we2"], params["be2"]),
        ("enc3", params["we3"], params["be3"]),
        ("head",
         jnp.concatenate([params["wmu"], params["wls"]], axis=1),
         jnp.concatenate([params["bmu"], params["bls"]], axis=1)),
        ("dec1", params["wd1"], params["bd1"]),
        ("dec2", params["wd2"], params["bd2"]),
        ("dec3", params["wd3"], params["bd3"]),
        ("dec4", params["wd4"], params["bd4"]),
    ]
    max_fan_in = max(w.shape[0] for _, w, _ in entries)
    total_cols = sum(w.shape[1] for _, w, _ in entries)
    bias_row = max_fan_in

    slab = jnp.zeros((bias_row + 1, total_cols), jnp.float32)
    layout = {}
    off = 0
    for name, w, b in entries:
        fi, fo = w.shape
        slab = slab.at[:fi, off:off + fo].set(w.astype(jnp.float32))
        slab = slab.at[bias_row:bias_row + 1, off:off + fo].set(
            b.reshape(1, fo).astype(jnp.float32))
        layout[name] = (fi, fo, off)
        off += fo
    return slab, layout, bias_row


# ----------------------------------------------------------------------------
# Pallas kernel (built as a closure over the static packing layout)
# ----------------------------------------------------------------------------
def make_vae_kernel(layout, latent_size, bias_row):
    def kernel(x_ref, eps_ref, p_ref, out_ref):
        P = p_ref[...]  # whole parameter slab, resident in VMEM / vregs

        def layer(h, name):
            fi, fo, off = layout[name]
            w = P[0:fi, off:off + fo]                       # static slice
            b = P[bias_row:bias_row + 1, off:off + fo]      # static slice
            return jnp.dot(h, w, preferred_element_type=jnp.float32) + b

        x = x_ref[...]

        # ---- encoder ----
        h = jnp.tanh(layer(x, "enc1"))
        h = jnp.tanh(layer(h, "enc2"))
        h = jnp.tanh(layer(h, "enc3"))

        # ---- fused mu | log_std head (single matmul) ----
        head = layer(h, "head")
        mu = head[:, :latent_size]
        log_std = head[:, latent_size:]

        # ---- reparametrize: z = mu + eps * exp(log_std) ----
        z = mu + eps_ref[...] * jnp.exp(log_std)

        # ---- decoder ----
        d = jnp.tanh(layer(z, "dec1"))
        d = jnp.tanh(layer(d, "dec2"))
        d = jnp.tanh(layer(d, "dec3"))
        recon = layer(d, "dec4")

        # single lane-contiguous output slab: recon | mu | log_std
        out_ref[...] = jnp.concatenate([recon, mu, log_std], axis=-1)

    return kernel


# ----------------------------------------------------------------------------
# Wrapper
# ----------------------------------------------------------------------------
def vae_forward(x, eps, params, *, max_batch_tile=512):
    """x: [B, input_size] f32, eps: [B, latent_size] f32, params: dict."""
    B, input_size = x.shape
    latent_size = eps.shape[1]
    out_width = input_size + 2 * latent_size

    pslab, layout, bias_row = pack_params(params)
    p_rows, p_cols = pslab.shape

    # Batch tile: multiple of 8 (f32 sublanes), capped so big batches pipeline.
    TB = min(max_batch_tile, _round_up(B, 8))
    Bp = _round_up(B, TB)
    if Bp != B:
        x = jnp.pad(x, ((0, Bp - B), (0, 0)))
        eps = jnp.pad(eps, ((0, Bp - B), (0, 0)))

    kernel = make_vae_kernel(layout, latent_size, bias_row)

    out = pl.pallas_call(
        kernel,
        out_shape=jax.ShapeDtypeStruct((Bp, out_width), jnp.float32),
        grid=(Bp // TB,),
        in_specs=[
            pl.BlockSpec((TB, input_size), lambda i: (i, 0)),     # x
            pl.BlockSpec((TB, latent_size), lambda i: (i, 0)),    # eps
            pl.BlockSpec((p_rows, p_cols), lambda i: (0, 0)),     # params (resident)
        ],
        out_specs=pl.BlockSpec((TB, out_width), lambda i: (i, 0)),
        compiler_params=pltpu.CompilerParams(
            dimension_semantics=("parallel",)),
    )(x, eps, pslab)

    recon = out[:B, :input_size]
    mu = out[:B, input_size:input_size + latent_size]
    log_std = out[:B, input_size + latent_size:]
    return recon, mu, log_std


# ----------------------------------------------------------------------------
# Deterministic parameter init (mimics nn.Linear: U(-1/sqrt(fan_in), +...))
# ----------------------------------------------------------------------------
def init_vae_params(key, input_size, latent_size):
    neuron_list = [10, 20, 10]

    def linear_init(key, fan_in, fan_out):
        kw, kb = jax.random.split(key)
        bound = 1.0 / jnp.sqrt(fan_in)
        w = jax.random.uniform(kw, (fan_in, fan_out), jnp.float32, -bound, bound)
        b = jax.random.uniform(kb, (1, fan_out), jnp.float32, -bound, bound)
        return w, b

    keys = jax.random.split(key, 9)
    params = {}
    # encoder
    params["we1"], params["be1"] = linear_init(keys[0], input_size, neuron_list[0])
    params["we2"], params["be2"] = linear_init(keys[1], neuron_list[0], neuron_list[1])
    params["we3"], params["be3"] = linear_init(keys[2], neuron_list[1], neuron_list[2])
    # heads
    params["wmu"], params["bmu"] = linear_init(keys[3], neuron_list[2], latent_size)
    params["wls"], params["bls"] = linear_init(keys[4], neuron_list[2], latent_size)
    # decoder
    params["wd1"], params["bd1"] = linear_init(keys[5], latent_size, neuron_list[2])
    params["wd2"], params["bd2"] = linear_init(keys[6], neuron_list[2], neuron_list[1])
    params["wd3"], params["bd3"] = linear_init(keys[7], neuron_list[1], neuron_list[0])
    params["wd4"], params["bd4"] = linear_init(keys[8], neuron_list[0], input_size)
    return params


# ----------------------------------------------------------------------------
# Pure-JAX reference for correctness check
# ----------------------------------------------------------------------------
def vae_forward_ref(x, eps, p):
    def lin(h, w, b):
        return h @ w + b
    h = jnp.tanh(lin(x, p["we1"], p["be1"]))
    h = jnp.tanh(lin(h, p["we2"], p["be2"]))
    h = jnp.tanh(lin(h, p["we3"], p["be3"]))
    mu = lin(h, p["wmu"], p["bmu"])
    log_std = lin(h, p["wls"], p["bls"])
    z = mu + eps * jnp.exp(log_std)
    d = jnp.tanh(lin(z, p["wd1"], p["bd1"]))
    d = jnp.tanh(lin(d, p["wd2"], p["bd2"]))
    d = jnp.tanh(lin(d, p["wd3"], p["bd3"]))
    recon = lin(d, p["wd4"], p["bd4"])
    return recon, mu, log_std


if __name__ == "__main__":
    input_size = 16
    latent_size = 4
    batch = 8

    key = jax.random.PRNGKey(0)
    k_param, k_x, k_eps = jax.random.split(key, 3)

    params = init_vae_params(k_param, input_size, latent_size)
    x = jax.random.normal(k_x, (batch, input_size), jnp.float32)
    # reparametrization noise eps ~ N(0,1) (drawn in the wrapper, consumed in-kernel)
    eps = jax.random.normal(k_eps, (batch, latent_size), jnp.float32)

    recon, mu, log_std = vae_forward(x, eps, params)
    jax.block_until_ready((recon, mu, log_std))

    r_ref, mu_ref, ls_ref = vae_forward_ref(x, eps, params)
    assert jnp.allclose(recon, r_ref, atol=1e-5), "recon mismatch"
    assert jnp.allclose(mu, mu_ref, atol=1e-5), "mu mismatch"
    assert jnp.allclose(log_std, ls_ref, atol=1e-5), "log_std mismatch"

    print("KERNEL_OK")
</pallas_src>

<mosaic_0001>
module attributes {stable_mosaic.version = 11 : i64} {
  func.func @kernel(%arg0: i32, %arg1: memref<8x16xf32, #tpu.memory_space<vmem>>, %arg2: memref<8x4xf32, #tpu.memory_space<vmem>>, %arg3: memref<21x104xf32, #tpu.memory_space<vmem>>, %arg4: memref<8x24xf32, #tpu.memory_space<vmem>>) attributes {dimension_semantics = [#tpu.dimension_semantics<parallel>], iteration_bounds = array<i64: 1>, scalar_prefetch = 0 : i64, scratch_operands = 0 : i64, tpu.core_type = #tpu.core_type<tc>, window_params = [{transform_indices = @transform_0, window_bounds = array<i64: 8, 16>}, {transform_indices = @transform_1, window_bounds = array<i64: 8, 4>}, {pipeline_mode = #tpu.pipeline_mode<synchronous>, transform_indices = @transform_2, window_bounds = array<i64: 21, 104>}, {transform_indices = @transform_3, window_bounds = array<i64: 8, 24>}]} {
    %c0 = arith.constant 0 : index
    %c0_0 = arith.constant 0 : index
    %0 = vector.load %arg3[%c0, %c0_0] : memref<21x104xf32, #tpu.memory_space<vmem>>, vector<21x104xf32>
    %c0_1 = arith.constant 0 : index
    %c0_2 = arith.constant 0 : index
    %1 = vector.load %arg1[%c0_1, %c0_2] : memref<8x16xf32, #tpu.memory_space<vmem>>, vector<8x16xf32>
    %2 = vector.extract_strided_slice %0 {offsets = [0, 0], sizes = [16, 10], strides = [1, 1]} : vector<21x104xf32> to vector<16x10xf32>
    %3 = vector.extract_strided_slice %0 {offsets = [20, 0], sizes = [1, 10], strides = [1, 1]} : vector<21x104xf32> to vector<1x10xf32>
    %cst = arith.constant dense<0.000000e+00> : vector<8x10xf32>
    %4 = tpu.matmul %1, %2, %cst {dimension_numbers = #tpu.dot_dimension_numbers<[1], [0], [0], [1], [0, 0, 1, 1], [], []>} : vector<8x16xf32>, vector<16x10xf32>, vector<8x10xf32> -> vector<8x10xf32>
    %5 = vector.broadcast %3 : vector<1x10xf32> to vector<8x10xf32>
    %6 = arith.addf %4, %5 : vector<8x10xf32>
    %7 = math.tanh %6 : vector<8x10xf32>
    %8 = vector.extract_strided_slice %0 {offsets = [0, 10], sizes = [10, 20], strides = [1, 1]} : vector<21x104xf32> to vector<10x20xf32>
    %9 = vector.extract_strided_slice %0 {offsets = [20, 10], sizes = [1, 20], strides = [1, 1]} : vector<21x104xf32> to vector<1x20xf32>
    %cst_3 = arith.constant dense<0.000000e+00> : vector<8x20xf32>
    %10 = tpu.matmul %7, %8, %cst_3 {dimension_numbers = #tpu.dot_dimension_numbers<[1], [0], [0], [1], [0, 0, 1, 1], [], []>} : vector<8x10xf32>, vector<10x20xf32>, vector<8x20xf32> -> vector<8x20xf32>
    %11 = vector.broadcast %9 : vector<1x20xf32> to vector<8x20xf32>
    %12 = arith.addf %10, %11 : vector<8x20xf32>
    %13 = math.tanh %12 : vector<8x20xf32>
    %14 = vector.extract_strided_slice %0 {offsets = [0, 30], sizes = [20, 10], strides = [1, 1]} : vector<21x104xf32> to vector<20x10xf32>
    %15 = vector.extract_strided_slice %0 {offsets = [20, 30], sizes = [1, 10], strides = [1, 1]} : vector<21x104xf32> to vector<1x10xf32>
    %cst_4 = arith.constant dense<0.000000e+00> : vector<8x10xf32>
    %16 = tpu.matmul %13, %14, %cst_4 {dimension_numbers = #tpu.dot_dimension_numbers<[1], [0], [0], [1], [0, 0, 1, 1], [], []>} : vector<8x20xf32>, vector<20x10xf32>, vector<8x10xf32> -> vector<8x10xf32>
    %17 = vector.broadcast %15 : vector<1x10xf32> to vector<8x10xf32>
    %18 = arith.addf %16, %17 : vector<8x10xf32>
    %19 = math.tanh %18 : vector<8x10xf32>
    %20 = vector.extract_strided_slice %0 {offsets = [0, 40], sizes = [10, 8], strides = [1, 1]} : vector<21x104xf32> to vector<10x8xf32>
    %21 = vector.extract_strided_slice %0 {offsets = [20, 40], sizes = [1, 8], strides = [1, 1]} : vector<21x104xf32> to vector<1x8xf32>
    %cst_5 = arith.constant dense<0.000000e+00> : vector<8x8xf32>
    %22 = tpu.matmul %19, %20, %cst_5 {dimension_numbers = #tpu.dot_dimension_numbers<[1], [0], [0], [1], [0, 0, 1, 1], [], []>} : vector<8x10xf32>, vector<10x8xf32>, vector<8x8xf32> -> vector<8x8xf32>
    %23 = vector.broadcast %21 : vector<1x8xf32> to vector<8x8xf32>
    %24 = arith.addf %22, %23 : vector<8x8xf32>
    %25 = vector.extract_strided_slice %24 {offsets = [0, 0], sizes = [8, 4], strides = [1, 1]} : vector<8x8xf32> to vector<8x4xf32>
    %26 = vector.extract_strided_slice %24 {offsets = [0, 4], sizes = [8, 4], strides = [1, 1]} : vector<8x8xf32> to vector<8x4xf32>
    %c0_6 = arith.constant 0 : index
    %c0_7 = arith.constant 0 : index
    %27 = vector.load %arg2[%c0_6, %c0_7] : memref<8x4xf32, #tpu.memory_space<vmem>>, vector<8x4xf32>
    %28 = math.exp %26 : vector<8x4xf32>
    %29 = arith.mulf %27, %28 : vector<8x4xf32>
    %30 = arith.addf %25, %29 : vector<8x4xf32>
    %31 = vector.extract_strided_slice %0 {offsets = [0, 48], sizes = [4, 10], strides = [1, 1]} : vector<21x104xf32> to vector<4x10xf32>
    %32 = vector.extract_strided_slice %0 {offsets = [20, 48], sizes = [1, 10], strides = [1, 1]} : vector<21x104xf32> to vector<1x10xf32>
    %cst_8 = arith.constant dense<0.000000e+00> : vector<8x10xf32>
    %33 = tpu.matmul %30, %31, %cst_8 {dimension_numbers = #tpu.dot_dimension_numbers<[1], [0], [0], [1], [0, 0, 1, 1], [], []>} : vector<8x4xf32>, vector<4x10xf32>, vector<8x10xf32> -> vector<8x10xf32>
    %34 = vector.broadcast %32 : vector<1x10xf32> to vector<8x10xf32>
    %35 = arith.addf %33, %34 : vector<8x10xf32>
    %36 = math.tanh %35 : vector<8x10xf32>
    %37 = vector.extract_strided_slice %0 {offsets = [0, 58], sizes = [10, 20], strides = [1, 1]} : vector<21x104xf32> to vector<10x20xf32>
    %38 = vector.extract_strided_slice %0 {offsets = [20, 58], sizes = [1, 20], strides = [1, 1]} : vector<21x104xf32> to vector<1x20xf32>
    %cst_9 = arith.constant dense<0.000000e+00> : vector<8x20xf32>
    %39 = tpu.matmul %36, %37, %cst_9 {dimension_numbers = #tpu.dot_dimension_numbers<[1], [0], [0], [1], [0, 0, 1, 1], [], []>} : vector<8x10xf32>, vector<10x20xf32>, vector<8x20xf32> -> vector<8x20xf32>
    %40 = vector.broadcast %38 : vector<1x20xf32> to vector<8x20xf32>
    %41 = arith.addf %39, %40 : vector<8x20xf32>
    %42 = math.tanh %41 : vector<8x20xf32>
    %43 = vector.extract_strided_slice %0 {offsets = [0, 78], sizes = [20, 10], strides = [1, 1]} : vector<21x104xf32> to vector<20x10xf32>
    %44 = vector.extract_strided_slice %0 {offsets = [20, 78], sizes = [1, 10], strides = [1, 1]} : vector<21x104xf32> to vector<1x10xf32>
    %cst_10 = arith.constant dense<0.000000e+00> : vector<8x10xf32>
    %45 = tpu.matmul %42, %43, %cst_10 {dimension_numbers = #tpu.dot_dimension_numbers<[1], [0], [0], [1], [0, 0, 1, 1], [], []>} : vector<8x20xf32>, vector<20x10xf32>, vector<8x10xf32> -> vector<8x10xf32>
    %46 = vector.broadcast %44 : vector<1x10xf32> to vector<8x10xf32>
    %47 = arith.addf %45, %46 : vector<8x10xf32>
    %48 = math.tanh %47 : vector<8x10xf32>
    %49 = vector.extract_strided_slice %0 {offsets = [0, 88], sizes = [10, 16], strides = [1, 1]} : vector<21x104xf32> to vector<10x16xf32>
    %50 = vector.extract_strided_slice %0 {offsets = [20, 88], sizes = [1, 16], strides = [1, 1]} : vector<21x104xf32> to vector<1x16xf32>
    %cst_11 = arith.constant dense<0.000000e+00> : vector<8x16xf32>
    %51 = tpu.matmul %48, %49, %cst_11 {dimension_numbers = #tpu.dot_dimension_numbers<[1], [0], [0], [1], [0, 0, 1, 1], [], []>} : vector<8x10xf32>, vector<10x16xf32>, vector<8x16xf32> -> vector<8x16xf32>
    %52 = vector.broadcast %50 : vector<1x16xf32> to vector<8x16xf32>
    %53 = arith.addf %51, %52 : vector<8x16xf32>
    %54 = tpu.concatenate %53, %25, %26 in 1 : vector<8x16xf32>, vector<8x4xf32>, vector<8x4xf32> -> vector<8x24xf32>
    %c0_12 = arith.constant 0 : index
    %c0_13 = arith.constant 0 : index
    %55 = vector.load %arg4[%c0_12, %c0_13] : memref<8x24xf32, #tpu.memory_space<vmem>>, vector<8x24xf32>
    tpu.vector_store %arg4[%c0_12, %c0_13], %54 {strides = array<i32>} : memref<8x24xf32, #tpu.memory_space<vmem>>, vector<8x24xf32>,
    return
  }
  func.func @transform_0(%arg0: i32) -> (i32, i32) {
    %c0_i32 = arith.constant 0 : i32
    %c0_i32_0 = arith.constant 0 : i32
    return %arg0, %c0_i32 : i32, i32
  }
  func.func @transform_1(%arg0: i32) -> (i32, i32) {
    %c0_i32 = arith.constant 0 : i32
    %c0_i32_0 = arith.constant 0 : i32
    return %arg0, %c0_i32 : i32, i32
  }
  func.func @transform_2(%arg0: i32) -> (i32, i32) {
    %c0_i32 = arith.constant 0 : i32
    %c0_i32_0 = arith.constant 0 : i32
    %c0_i32_1 = arith.constant 0 : i32
    return %c0_i32, %c0_i32_0 : i32, i32
  }
  func.func @transform_3(%arg0: i32) -> (i32, i32) {
    %c0_i32 = arith.constant 0 : i32
    %c0_i32_0 = arith.constant 0 : i32
    return %arg0, %c0_i32 : i32, i32
  }
}

</mosaic_0001>

<bundles_post_ra>
// kernel: tpu_custom_call.1
= control target key start
LH: loop header
LB: loop body
LE: loop exit
PB: predicated region body
PF: predicated region fallthrough
CT: control target
= control target key end

     0   :  { %8 = vsyncpa [#allocation3], 0  ;;  %s540_s0 = inlined_call_operand.vmem [shape: f32[8,16], index: 0, kind: input, shape index: {}]   ;;  %s541_s1 = inlined_call_operand.vmem [shape: f32[8,4], index: 1, kind: input, shape index: {}]   ;;  %s542_s2 = inlined_call_operand.hbm [shape: f32[21,104], index: 2, kind: input, shape index: {}]   ;;  %s543_s3 = inlined_call_operand.hbm [shape: f32[8,24], index: 3, kind: output, shape index: {}]  }
   0x1   :  { %9 = vsyncpa [#allocation4], 0  ;;  %s18_s14 = sshll.u32 %s542_s2, 4  ;;  %s447_s15 = smov [#allocation2]   ;;  %s19_s14 = int_to_ptr.hbm [resolvable:$true] %s18_s14 }
   0x2   :  { %s20_s16 = sshll.u32 %s447_s15, 4  ;;  %s448_s17 = smov 128   ;;  %s21_s16 = int_to_ptr.vmem [resolvable:$true] %s20_s16 }
   0x3   :  { %s449_s18 = smov 8  }
   0x4   :  { %26 = dma.hbm_to_vmem [thread:$0]  %s19_s14, 384, %s21_s16, [#allocation3], %s448_s17, %s448_s17, %s449_s18  }
   0x5   :  { %443 = dma.done.wait [#allocation3], 384  }
   0x6   :  { %444 = vsyncadd [#allocation3], 4294966912  ;;  %v483_v0 = vld [vmem:[#allocation2 + $0x8] sm:$0xff]  ;;  %v485_v1 = vld [vmem:[#allocation2] sm:$0xff]  ;;  %vm36_vm0 = vcmask 130048   ;;  %s450_s2 = smov 118  }
   0x7   :  { %54 = vmatpush.msra.mxu0 %v483_v0  ;;  %v34_v2 = vld [vmem:[%s540_s0] sm:$0xff]  ;;  %65 = vrot.lane.b32.xlu0 %v483_v0, %s450_s2  ;;  %v495_v3 = vld [vmem:[#allocation2 + $0x10] sm:$0x1f]  ;;  %s451_s21 = smov 98   ;;  %v501_v5 = vpack.i.bf16 %v485_v1, %v483_v0  ;;  %vm76_vm1 = vcmask 1041408   ;;  %vm72_vm2 = vcmask 80896  }
   0x8   :  { %v35_v4 = vperm.slane %v495_v3, 4  ;;  %s452_s0 = smov 88   ;;  %vm116_vm3 = vcmask 1043456   ;;  %vm112_vm4 = vcmask 162816   ;;  %s453_s22 = smov 80   ;;  %v173_v31 = vld [vmem:[%s541_s1] sm:$0xff] }
   0x9   :  { %55 = vmatpush.msra.mxu0 %v485_v1  ;;  %372 = vrot.lane.b32.xlu2 %v501_v5, %s451_s21  ;;  %s454_s23 = smov 70   ;;  %s455_s24 = smov 50   ;;  %vm187_vm5 = vcmask 31744   ;;  %vm324_vm6 = vcmask 195584  }
   0xa   :  { %343 = vmatmul.msk.f32.vlgmr.msra.gmra.mxu0 %vm36_vm0, %v34_v2  ;;  %69 = vrot.lane.b32.xlu1 %v35_v4, %s450_s2  ;;  %s456_s25 = smov 40   ;;  %s457_s26 = smov 124  }
   0xb   :  { %s458_s27 = smov 16   ;;  %s459_s1 = smov [#allocation5]  }
   0xc   :  { %s331_s30 = sshll.u32 %s459_s1, 4  ;;  %s333_s6 = sshll.u32 %s543_s3, 4  ;;  %s332_s30 = int_to_ptr.vmem [resolvable:$true] %s331_s30  ;;  %s334_s6 = int_to_ptr.hbm [resolvable:$true] %s333_s6 }
   0xf   :  { %63 = vrot.lane.b32.xlu0 %v485_v1, %s450_s2 }
  0x11   :  { %109 = vrot.lane.b32.xlu2 %v35_v4, %s451_s21 }
  0x12   :  { %105 = vrot.lane.b32.xlu1 %v495_v3, %s451_s21 }
  0x17   :  { %142 = vrot.lane.b32.xlu0 %v483_v0, %s452_s0 }
  0x19   :  { %145 = vrot.lane.b32.xlu2 %v35_v4, %s452_s0 }
  0x1a   :  { %140 = vrot.lane.b32.xlu1 %v485_v1, %s452_s0 }
  0x21   :  { %184 = vrot.lane.b32.xlu2 %v35_v4, %s453_s22 }
  0x22   :  { %182 = vrot.lane.b32.xlu1 %v485_v1, %s453_s22 }
  0x29   :  { %219 = vrot.lane.b32.xlu2 %v35_v4, %s454_s23 }
  0x2a   :  { %214 = vrot.lane.b32.xlu1 %v485_v1, %s454_s23 }
  0x31   :  { %256 = vrot.lane.b32.xlu2 %v35_v4, %s455_s24 }
  0x32   :  { %377 = vrot.lane.b32.xlu1 %v501_v5, %s455_s24 }
  0x39   :  { %290 = vrot.lane.b32.xlu2 %v35_v4, %s456_s25 }
  0x3a   :  { %285 = vrot.lane.b32.xlu1 %v485_v1, %s456_s25 }
  0x63   :  { %v373_v13 = vpop.permute.xlu2 %372 }
  0x64   :  { %v374_v14 = vunpack.i.l.bf16 %v373_v13  ;;  %v375_v15 = vunpack.i.h.bf16 %v373_v13 }
  0x6b   :  { %v110_v21 = vpop.permute.xlu2 %109 }
  0x73   :  { %v146_v25 = vpop.permute.xlu2 %145 }
  0x79   :  { %v66_v6 = vpop.permute.xlu0 %65 }
  0x7a   :  { %344 = vmatpush.msk.msra.mxu1 %vm76_vm1, %v66_v6 }
  0x7b   :  { %v185_v39 = vpop.permute.xlu2 %184 }
  0x7c   :  { %v70_v11 = vpop.permute.xlu1 %69 }
  0x81   :  { %v64_v7 = vpop.permute.xlu0 %63 }
  0x82   :  { %94 = vmatpush.msra.mxu1 %v64_v7 }
  0x83   :  { %v220_v46 = vpop.permute.xlu2 %219 }
  0x84   :  { %v106_v12 = vpop.permute.xlu1 %105 }
  0x85   :  { %346 = vmatpush.msk.msra.mxu2 %vm116_vm3, %v106_v12 }
  0x87   :  { %v57_v8 = vpop.f32.mrf.mxu0  ;;  %133 = vmatpush.msra.mxu2 %v374_v14 }
  0x88   :  { %v58_v9 = vadd.f32 %v57_v8, %v35_v4 }
  0x89   :  { %134 = vmatpush.msra.mxu2 %v375_v15  ;;  %v143_v19 = vpop.permute.xlu0 %142 }
  0x8a   :  { %381 = vtanh.f32 %v58_v9  ;;  %348 = vmatpush.msk.msra.mxu3 %vm76_vm1, %v143_v19 }
  0x8b   :  { %v257_v51 = vpop.permute.xlu2 %256 }
  0x8c   :  { %v141_v20 = vpop.permute.xlu1 %140 }
  0x8d   :  { %168 = vmatpush.msra.mxu3 %v141_v20 }
  0x90   :  { %v382_v10 = vpop.eup %381 }
  0x91   :  { %345 = vmatmul.msk.f32.vlgmr.msra.gmra.mxu1 %vm72_vm2, %v382_v10 }
  0x93   :  { %v291_v55 = vpop.permute.xlu2 %290 }
  0x94   :  { %v183_v30 = vpop.permute.xlu1 %182 }
  0x95   :  { %350 = vmatpush.msk.msrb.mxu0 %vm116_vm3, %v183_v30 }
  0x9c   :  { %v215_v38 = vpop.permute.xlu1 %214 }
  0xa4   :  { %v378_v43 = vpop.permute.xlu1 %377 }
  0xa5   :  { %v379_v44 = vunpack.i.l.bf16 %v378_v43  ;;  %v380_v45 = vunpack.i.h.bf16 %v378_v43 }
  0xac   :  { %v286_v50 = vpop.permute.xlu1 %285 }
 0x10e   :  { %v96_v16 = vpop.f32.mrf.mxu1 }
 0x10f   :  { %v97_v17 = vadd.f32 %v96_v16, %v70_v11 }
 0x111   :  { %383 = vtanh.f32 %v97_v17 }
 0x117   :  { %v384_v18 = vpop.eup %383 }
 0x118   :  { %347 = vmatmul.msk.f32.vlgmr.msra.gmra.mxu2 %vm112_vm4, %v384_v18 }
 0x19b   :  { %v136_v22 = vpop.f32.mrf.mxu2 }
 0x19c   :  { %v137_v23 = vadd.f32 %v136_v22, %v110_v21 }
 0x19e   :  { %385 = vtanh.f32 %v137_v23 }
 0x1a4   :  { %v386_v24 = vpop.eup %385 }
 0x1a5   :  { %349 = vmatmul.msk.f32.vlgmr.msra.gmra.mxu3 %vm72_vm2, %v386_v24 }
 0x228   :  { %v170_v26 = vpop.f32.mrf.mxu3 }
 0x229   :  { %v171_v27 = vadd.f32 %v170_v26, %v146_v25 }
 0x22b   :  { %v174_v28 = vmul.f32 1.442695, %v171_v27 }
 0x22d   :  { %387 = vpow2.f32 %v174_v28 }
 0x233   :  { %v388_v29 = vpop.eup %387 }
 0x234   :  { %177 = vrot.lane.b32.xlu0 %v388_v29, %s457_s26 }
 0x23c   :  { %216 = vrot.lane.b32.xlu0 %v483_v0, %s454_s23 }
 0x244   :  { %252 = vrot.lane.b32.xlu0 %v495_v3, %s455_s24 }
 0x24c   :  { %287 = vrot.lane.b32.xlu0 %v483_v0, %s456_s25 }
 0x254   :  { %319 = vrot.lane.b32.xlu0 %v171_v27, %s458_s27 }
 0x2a6   :  { %v178_v32 = vpop.permute.xlu0 %177 }
 0x2a7   :  { %v180_v33 = vmul.f32 %v178_v32, %v173_v31 }
 0x2a9   :  { %v181_v34 = vadd.f32 %v180_v33, %v171_v27 }
 0x2ab   :  { %351 = vmatmul.msk.f32.vlgmr.msrb.gmra.mxu0 %vm187_vm5, %v181_v34 }
 0x2ae   :  { %v217_v35 = vpop.permute.xlu0 %216 }
 0x2af   :  { %352 = vmatpush.msk.msrb.mxu1 %vm76_vm1, %v217_v35 }
 0x2b1   :  { %242 = vmatpush.msrb.mxu1 %v215_v38 }
 0x2b6   :  { %v253_v36 = vpop.permute.xlu0 %252 }
 0x2b7   :  { %354 = vmatpush.msk.msrb.mxu3 %vm116_vm3, %v253_v36 }
 0x2b9   :  { %278 = vmatpush.msrb.mxu3 %v379_v44 }
 0x2bb   :  { %279 = vmatpush.msrb.mxu3 %v380_v45 }
 0x2be   :  { %v288_v37 = vpop.permute.xlu0 %287 }
 0x2bf   :  { %356 = vmatpush.msk.msrb.mxu2 %vm76_vm1, %v288_v37 }
 0x2c1   :  { %313 = vmatpush.msrb.mxu2 %v286_v50 }
 0x2c6   :  { %v320_v58 = vpop.permute.xlu0 %319 }
 0x328   :  { %v210_v40 = vpop.f32.mrf.mxu0 }
 0x329   :  { %v211_v41 = vadd.f32 %v210_v40, %v185_v39 }
 0x32b   :  { %389 = vtanh.f32 %v211_v41 }
 0x331   :  { %v390_v42 = vpop.eup %389 }
 0x332   :  { %353 = vmatmul.msk.f32.vlgmr.msrb.gmra.mxu1 %vm72_vm2, %v390_v42 }
 0x3af   :  { %v244_v47 = vpop.f32.mrf.mxu1 }
 0x3b0   :  { %v245_v48 = vadd.f32 %v244_v47, %v220_v46 }
 0x3b2   :  { %391 = vtanh.f32 %v245_v48 }
 0x3b8   :  { %v392_v49 = vpop.eup %391 }
 0x3b9   :  { %355 = vmatmul.msk.f32.vlgmr.msrb.gmra.mxu3 %vm112_vm4, %v392_v49 }
 0x43c   :  { %v281_v52 = vpop.f32.mrf.mxu3 }
 0x43d   :  { %v282_v53 = vadd.f32 %v281_v52, %v257_v51 }
 0x43f   :  { %393 = vtanh.f32 %v282_v53 }
 0x445   :  { %v394_v54 = vpop.eup %393 }
 0x446   :  { %357 = vmatmul.msk.f32.vlgmr.msrb.gmra.mxu2 %vm72_vm2, %v394_v54 }
 0x4c9   :  { %v315_v56 = vpop.f32.mrf.mxu2 }
 0x4ca   :  { %v316_v57 = vadd.f32 %v315_v56, %v291_v55 }
 0x4cc   :  { %v322_v59 = vsel %vm36_vm0, %v316_v57, %v320_v58 }
 0x4cd   :  { %v323_v60 = vsel %vm112_vm4, %v322_v59, %v320_v58 }
 0x4ce   :  { %325 = vst.msk [vmem:[#allocation5] sm:$0xff] %vm324_vm6, %v323_v60 }
 0x4cf   :  { %336 = dma.vmem_to_hbm [thread:$0]  %s332_s30, 128, %s334_s6, [#allocation4]  }
 0x4d0   :  { %445 = dma.done.wait [#allocation4], 128  }
 0x4d1   :  { %446 = vsyncadd [#allocation4], 4294967168 }
 0x4d2   :  { %341 = vsyncpa [#allocation3], 1 }
 0x4d3   :  { %342 = vsyncpa [#allocation4], 1 }

</bundles_post_ra>
